<compile_context>
chip_gen: v6e
topology: v6e:2x2x1
jax: 0.10.0
libtpu: 0.0.40
codegen_flags: <defaults>
</compile_context>

<pallas_src>
import jax
import jax.numpy as jnp
from jax.experimental import pallas as pl
from jax.experimental.pallas import tpu as pltpu

LANE = 128


def _round_up(n, m):
    return ((n + m - 1) // m) * m


def _pad2(a, rows, cols):
    r, c = a.shape
    return jnp.pad(a, ((0, rows - r), (0, cols - c)))


def _pick_tile_m(B, max_tile=2048):
    """Batch tile: multiple of 16 (bf16 sublane pack), capped at max_tile.

    - Small/medium batches (<=1024 rows): a single grid step. Extra steps are
      pure ~0.35us overhead on single-TC chips (v5e/v6e), and megacore
      splitting on v7x does not pay below ~512 rows per core.
    - Larger batches: two balanced steps (even step count keeps both v7x
      TensorCores busy) up to the max_tile cap, then as many max_tile steps
      as needed.
    """
    Bp = _round_up(max(B, 16), 16)
    if Bp <= 1024:
        return min(Bp, max_tile)
    if Bp <= 2 * max_tile:
        return _round_up((Bp + 1) // 2, 16)
    return max_tile


# ------------------------------- kernel body --------------------------------

def _mlp_kernel(x_ref,
                w1_ref, b1_ref,
                w2_ref, b2_ref,
                w3_ref, b3_ref,
                w4_ref, b4_ref,
                o_ref):
    """Fused generator forward for one batch tile.

    x arrives in f32 (cast to the bf16 compute dtype in-VMEM); weights are
    bf16; all matmuls accumulate in f32 on the MXU; bias-add / ReLU stay f32.
    """
    cd = w1_ref.dtype
    h = x_ref[...].astype(cd)
    # fc1 + relu
    h = jnp.dot(h, w1_ref[...], preferred_element_type=jnp.float32) + b1_ref[...]
    h = jnp.maximum(h, 0.0).astype(cd)
    # fc2 + relu
    h = jnp.dot(h, w2_ref[...], preferred_element_type=jnp.float32) + b2_ref[...]
    h = jnp.maximum(h, 0.0).astype(cd)
    # fc3 + relu
    h = jnp.dot(h, w3_ref[...], preferred_element_type=jnp.float32) + b3_ref[...]
    h = jnp.maximum(h, 0.0).astype(cd)
    # out (no activation) — output last dim is the true G_out (no lane pad).
    y = jnp.dot(h, w4_ref[...], preferred_element_type=jnp.float32) + b4_ref[...]
    o_ref[...] = y.astype(o_ref.dtype)


# ----------------------------- param preparation -----------------------------

def prepare_generator_params(params, compute_dtype=jnp.bfloat16):
    """Pad hidden widths to 128 lanes and cast weights to the compute dtype.

    Done ONCE (not per forward call). Zero-padded weight rows/columns and
    zero-padded biases keep the math exact: padded lanes compute to 0 and feed
    zero rows into the next layer. The output width of the final layer is NOT
    padded (small masked store is cheaper than 8x write inflation).
    """
    w1, b1 = params["w1"], params["b1"]
    w2, b2 = params["w2"], params["b2"]
    w3, b3 = params["w3"], params["b3"]
    w4, b4 = params["w4"], params["b4"]
    G_in = w1.shape[0]
    H1, H2, H3, G_out = w1.shape[1], w2.shape[1], w3.shape[1], w4.shape[1]
    H1p, H2p, H3p = (_round_up(d, LANE) for d in (H1, H2, H3))

    prepared = {
        "w1": _pad2(w1, G_in, H1p).astype(compute_dtype),
        "b1": _pad2(b1, 1, H1p).astype(jnp.float32),
        "w2": _pad2(w2, H1p, H2p).astype(compute_dtype),
        "b2": _pad2(b2, 1, H2p).astype(jnp.float32),
        "w3": _pad2(w3, H2p, H3p).astype(compute_dtype),
        "b3": _pad2(b3, 1, H3p).astype(jnp.float32),
        "w4": _pad2(w4, H3p, G_out).astype(compute_dtype),   # only rows padded
        "b4": b4.astype(jnp.float32),
        "dims": (G_in, H1p, H2p, H3p, G_out),
    }
    return prepared


# --------------------------------- forward -----------------------------------

def generator_forward(x, prepared, *, out_dtype=jnp.float32, max_tile_m=2048):
    """x: (B, G_in) float32. prepared: output of prepare_generator_params."""
    B, G_in = x.shape
    G_in_p, H1p, H2p, H3p, G_out = prepared["dims"]
    assert G_in == G_in_p, "input width mismatch with prepared params"

    w1p, b1p = prepared["w1"], prepared["b1"]
    w2p, b2p = prepared["w2"], prepared["b2"]
    w3p, b3p = prepared["w3"], prepared["b3"]
    w4p, b4p = prepared["w4"], prepared["b4"]

    # Batch tiling. Pad only when strictly needed (pad is a full extra copy of x).
    tile_m = _pick_tile_m(B, max_tile_m)
    B_pad = _round_up(B, tile_m)
    xp = x if B_pad == B else jnp.pad(x, ((0, B_pad - B), (0, 0)))

    full = lambda i: (0, 0)          # weights/biases: one full-array block
    row = lambda i: (i, 0)           # batch-tiled arrays

    grid_spec = pltpu.PrefetchScalarGridSpec(
        num_scalar_prefetch=0,
        grid=(B_pad // tile_m,),
        in_specs=[
            pl.BlockSpec((tile_m, G_in), row),
            pl.BlockSpec(w1p.shape, full), pl.BlockSpec(b1p.shape, full),
            pl.BlockSpec(w2p.shape, full), pl.BlockSpec(b2p.shape, full),
            pl.BlockSpec(w3p.shape, full), pl.BlockSpec(b3p.shape, full),
            pl.BlockSpec(w4p.shape, full), pl.BlockSpec(b4p.shape, full),
        ],
        out_specs=pl.BlockSpec((tile_m, G_out), row),
    )

    flops = 2 * B_pad * (G_in * H1p + H1p * H2p + H2p * H3p + H3p * G_out)
    bytes_accessed = (
        xp.size * xp.dtype.itemsize
        + B_pad * G_out * jnp.dtype(out_dtype).itemsize
        + sum(a.size * a.dtype.itemsize
              for a in (w1p, b1p, w2p, b2p, w3p, b3p, w4p, b4p)))
    cost = pl.CostEstimate(flops=flops, transcendentals=0,
                           bytes_accessed=bytes_accessed)

    out = pl.pallas_call(
        _mlp_kernel,
        out_shape=jax.ShapeDtypeStruct((B_pad, G_out), out_dtype),
        grid_spec=grid_spec,
        compiler_params=pltpu.CompilerParams(
            dimension_semantics=("parallel",)),
        cost_estimate=cost,
    )(xp, w1p, b1p, w2p, b2p, w3p, b3p, w4p, b4p)

    return out if B_pad == B else out[:B]


# ----------------------------- init + reference -----------------------------

def xavier_uniform(key, fan_in, fan_out, dtype=jnp.float32):
    # Matches nn.init.xavier_uniform_ (gain=1): U(-a, a), a = sqrt(6/(fan_in+fan_out))
    a = jnp.sqrt(6.0 / (fan_in + fan_out))
    # Stored as (in, out) so the kernel computes x @ W (PyTorch stores (out, in)).
    return jax.random.uniform(key, (fan_in, fan_out), dtype=dtype, minval=-a, maxval=a)


def linear_bias(key, fan_in, fan_out, dtype=jnp.float32):
    # PyTorch nn.Linear default bias init: U(-1/sqrt(fan_in), 1/sqrt(fan_in))
    bound = 1.0 / jnp.sqrt(jnp.asarray(fan_in, dtype))
    return jax.random.uniform(key, (1, fan_out), dtype=dtype, minval=-bound, maxval=bound)


def init_generator_params(key, G_in, G_out, w1, w2, w3):
    ks = jax.random.split(key, 8)
    return {
        "w1": xavier_uniform(ks[0], G_in, w1), "b1": linear_bias(ks[1], G_in, w1),
        "w2": xavier_uniform(ks[2], w1, w2),   "b2": linear_bias(ks[3], w1, w2),
        "w3": xavier_uniform(ks[4], w2, w3),   "b3": linear_bias(ks[5], w2, w3),
        "w4": xavier_uniform(ks[6], w3, G_out),"b4": linear_bias(ks[7], w3, G_out),
    }


def generator_ref_bf16(x, p, compute_dtype=jnp.bfloat16):
    """Pure-JAX reference mirroring the kernel's bf16-operand / f32-accumulate recipe."""
    cd = compute_dtype
    h = x.astype(cd)
    h = jax.nn.relu(jnp.dot(h, p["w1"].astype(cd),
                            preferred_element_type=jnp.float32) + p["b1"]).astype(cd)
    h = jax.nn.relu(jnp.dot(h, p["w2"].astype(cd),
                            preferred_element_type=jnp.float32) + p["b2"]).astype(cd)
    h = jax.nn.relu(jnp.dot(h, p["w3"].astype(cd),
                            preferred_element_type=jnp.float32) + p["b3"]).astype(cd)
    return jnp.dot(h, p["w4"].astype(cd),
                   preferred_element_type=jnp.float32) + p["b4"]


def generator_ref_f32(x, p):
    """Pure-JAX f32 reference implementing the PyTorch forward semantics."""
    h = jax.nn.relu(x @ p["w1"] + p["b1"])
    h = jax.nn.relu(h @ p["w2"] + p["b2"])
    h = jax.nn.relu(h @ p["w3"] + p["b3"])
    return h @ p["w4"] + p["b4"]


if __name__ == "__main__":
    # Small shapes consistent with generator(G_in, G_out, w1, w2, w3)
    G_in, G_out, W1, W2, W3 = 32, 16, 64, 64, 32
    B = 16

    key = jax.random.PRNGKey(0)
    k_params, k_x = jax.random.split(key)
    params = init_generator_params(k_params, G_in, G_out, W1, W2, W3)
    x = jax.random.normal(k_x, (B, G_in), dtype=jnp.float32)

    # Pad/cast the weights ONCE, reuse across forward calls.
    prepared = prepare_generator_params(params)

    y = generator_forward(x, prepared)
    y = jax.block_until_ready(y)
    assert y.shape == (B, G_out)

    # Tight check vs a reference that mirrors the kernel's precision recipe.
    y_ref = generator_ref_bf16(x, params)
    assert jnp.allclose(y, y_ref, atol=1e-3, rtol=1e-3), "mismatch vs bf16-emulated ref"

    # Loose sanity check vs the pure f32 PyTorch-equivalent reference.
    y_f32 = generator_ref_f32(x, params)
    assert jnp.allclose(y, y_f32, atol=5e-2, rtol=5e-2), "mismatch vs f32 reference"

    # Second case: batch not a multiple of 16 — exercises the batch-pad path.
    B2 = 37
    x2 = jax.random.normal(jax.random.PRNGKey(1), (B2, G_in), dtype=jnp.float32)
    y2 = jax.block_until_ready(generator_forward(x2, prepared))
    assert y2.shape == (B2, G_out)
    assert jnp.allclose(y2, generator_ref_bf16(x2, params), atol=1e-3, rtol=1e-3), \
        "mismatch vs bf16-emulated ref (padded batch)"

    print("KERNEL_OK")
</pallas_src>

<mosaic_0001>
module attributes {stable_mosaic.version = 11 : i64} {
  func.func @_mlp_kernel(%arg0: i32, %arg1: memref<16x32xf32, #tpu.memory_space<vmem>>, %arg2: memref<32x128xbf16, #tpu.memory_space<vmem>>, %arg3: memref<1x128xf32, #tpu.memory_space<vmem>>, %arg4: memref<128x128xbf16, #tpu.memory_space<vmem>>, %arg5: memref<1x128xf32, #tpu.memory_space<vmem>>, %arg6: memref<128x128xbf16, #tpu.memory_space<vmem>>, %arg7: memref<1x128xf32, #tpu.memory_space<vmem>>, %arg8: memref<128x16xbf16, #tpu.memory_space<vmem>>, %arg9: memref<1x16xf32, #tpu.memory_space<vmem>>, %arg10: memref<16x16xf32, #tpu.memory_space<vmem>>) attributes {dimension_semantics = [#tpu.dimension_semantics<parallel>], iteration_bounds = array<i64: 1>, scalar_prefetch = 0 : i64, scratch_operands = 0 : i64, tpu.core_type = #tpu.core_type<tc>, window_params = [{transform_indices = @transform_0, window_bounds = array<i64: 16, 32>}, {pipeline_mode = #tpu.pipeline_mode<synchronous>, transform_indices = @transform_1, window_bounds = array<i64: 32, 128>}, {pipeline_mode = #tpu.pipeline_mode<synchronous>, transform_indices = @transform_2, window_bounds = array<i64: 1, 128>}, {pipeline_mode = #tpu.pipeline_mode<synchronous>, transform_indices = @transform_3, window_bounds = array<i64: 128, 128>}, {pipeline_mode = #tpu.pipeline_mode<synchronous>, transform_indices = @transform_4, window_bounds = array<i64: 1, 128>}, {pipeline_mode = #tpu.pipeline_mode<synchronous>, transform_indices = @transform_5, window_bounds = array<i64: 128, 128>}, {pipeline_mode = #tpu.pipeline_mode<synchronous>, transform_indices = @transform_6, window_bounds = array<i64: 1, 128>}, {pipeline_mode = #tpu.pipeline_mode<synchronous>, transform_indices = @transform_7, window_bounds = array<i64: 128, 16>}, {pipeline_mode = #tpu.pipeline_mode<synchronous>, transform_indices = @transform_8, window_bounds = array<i64: 1, 16>}, {transform_indices = @transform_9, window_bounds = array<i64: 16, 16>}]} {
    %c0 = arith.constant 0 : index
    %c0_0 = arith.constant 0 : index
    %0 = vector.load %arg1[%c0, %c0_0] : memref<16x32xf32, #tpu.memory_space<vmem>>, vector<16x32xf32>
    %1 = arith.truncf %0 : vector<16x32xf32> to vector<16x32xbf16>
    %c0_1 = arith.constant 0 : index
    %c0_2 = arith.constant 0 : index
    %2 = vector.load %arg2[%c0_1, %c0_2] : memref<32x128xbf16, #tpu.memory_space<vmem>>, vector<32x128xbf16>
    %cst = arith.constant dense<0.000000e+00> : vector<16x128xf32>
    %3 = tpu.matmul %1, %2, %cst {dimension_numbers = #tpu.dot_dimension_numbers<[1], [0], [0], [1], [0, 0, 1, 1], [], []>} : vector<16x32xbf16>, vector<32x128xbf16>, vector<16x128xf32> -> vector<16x128xf32>
    %c0_3 = arith.constant 0 : index
    %c0_4 = arith.constant 0 : index
    %4 = vector.load %arg3[%c0_3, %c0_4] : memref<1x128xf32, #tpu.memory_space<vmem>>, vector<1x128xf32>
    %5 = vector.broadcast %4 : vector<1x128xf32> to vector<16x128xf32>
    %6 = arith.addf %3, %5 : vector<16x128xf32>
    %cst_5 = arith.constant 0.000000e+00 : f32
    %7 = vector.broadcast %cst_5 : f32 to vector<16x128xf32>
    %8 = arith.maximumf %6, %7 : vector<16x128xf32>
    %9 = arith.truncf %8 : vector<16x128xf32> to vector<16x128xbf16>
    %c0_6 = arith.constant 0 : index
    %c0_7 = arith.constant 0 : index
    %10 = vector.load %arg4[%c0_6, %c0_7] : memref<128x128xbf16, #tpu.memory_space<vmem>>, vector<128x128xbf16>
    %cst_8 = arith.constant dense<0.000000e+00> : vector<16x128xf32>
    %11 = tpu.matmul %9, %10, %cst_8 {dimension_numbers = #tpu.dot_dimension_numbers<[1], [0], [0], [1], [0, 0, 1, 1], [], []>} : vector<16x128xbf16>, vector<128x128xbf16>, vector<16x128xf32> -> vector<16x128xf32>
    %c0_9 = arith.constant 0 : index
    %c0_10 = arith.constant 0 : index
    %12 = vector.load %arg5[%c0_9, %c0_10] : memref<1x128xf32, #tpu.memory_space<vmem>>, vector<1x128xf32>
    %13 = vector.broadcast %12 : vector<1x128xf32> to vector<16x128xf32>
    %14 = arith.addf %11, %13 : vector<16x128xf32>
    %cst_11 = arith.constant 0.000000e+00 : f32
    %15 = vector.broadcast %cst_11 : f32 to vector<16x128xf32>
    %16 = arith.maximumf %14, %15 : vector<16x128xf32>
    %17 = arith.truncf %16 : vector<16x128xf32> to vector<16x128xbf16>
    %c0_12 = arith.constant 0 : index
    %c0_13 = arith.constant 0 : index
    %18 = vector.load %arg6[%c0_12, %c0_13] : memref<128x128xbf16, #tpu.memory_space<vmem>>, vector<128x128xbf16>
    %cst_14 = arith.constant dense<0.000000e+00> : vector<16x128xf32>
    %19 = tpu.matmul %17, %18, %cst_14 {dimension_numbers = #tpu.dot_dimension_numbers<[1], [0], [0], [1], [0, 0, 1, 1], [], []>} : vector<16x128xbf16>, vector<128x128xbf16>, vector<16x128xf32> -> vector<16x128xf32>
    %c0_15 = arith.constant 0 : index
    %c0_16 = arith.constant 0 : index
    %20 = vector.load %arg7[%c0_15, %c0_16] : memref<1x128xf32, #tpu.memory_space<vmem>>, vector<1x128xf32>
    %21 = vector.broadcast %20 : vector<1x128xf32> to vector<16x128xf32>
    %22 = arith.addf %19, %21 : vector<16x128xf32>
    %cst_17 = arith.constant 0.000000e+00 : f32
    %23 = vector.broadcast %cst_17 : f32 to vector<16x128xf32>
    %24 = arith.maximumf %22, %23 : vector<16x128xf32>
    %25 = arith.truncf %24 : vector<16x128xf32> to vector<16x128xbf16>
    %c0_18 = arith.constant 0 : index
    %c0_19 = arith.constant 0 : index
    %26 = vector.load %arg8[%c0_18, %c0_19] : memref<128x16xbf16, #tpu.memory_space<vmem>>, vector<128x16xbf16>
    %cst_20 = arith.constant dense<0.000000e+00> : vector<16x16xf32>
    %27 = tpu.matmul %25, %26, %cst_20 {dimension_numbers = #tpu.dot_dimension_numbers<[1], [0], [0], [1], [0, 0, 1, 1], [], []>} : vector<16x128xbf16>, vector<128x16xbf16>, vector<16x16xf32> -> vector<16x16xf32>
    %c0_21 = arith.constant 0 : index
    %c0_22 = arith.constant 0 : index
    %28 = vector.load %arg9[%c0_21, %c0_22] : memref<1x16xf32, #tpu.memory_space<vmem>>, vector<1x16xf32>
    %29 = vector.broadcast %28 : vector<1x16xf32> to vector<16x16xf32>
    %30 = arith.addf %27, %29 : vector<16x16xf32>
    %c0_23 = arith.constant 0 : index
    %c0_24 = arith.constant 0 : index
    %31 = vector.load %arg10[%c0_23, %c0_24] : memref<16x16xf32, #tpu.memory_space<vmem>>, vector<16x16xf32>
    tpu.vector_store %arg10[%c0_23, %c0_24], %30 {strides = array<i32>} : memref<16x16xf32, #tpu.memory_space<vmem>>, vector<16x16xf32>,
    return
  }
  func.func @transform_0(%arg0: i32) -> (i32, i32) {
    %c0_i32 = arith.constant 0 : i32
    %c0_i32_0 = arith.constant 0 : i32
    return %arg0, %c0_i32 : i32, i32
  }
  func.func @transform_1(%arg0: i32) -> (i32, i32) {
    %c0_i32 = arith.constant 0 : i32
    %c0_i32_0 = arith.constant 0 : i32
    %c0_i32_1 = arith.constant 0 : i32
    return %c0_i32, %c0_i32_0 : i32, i32
  }
  func.func @transform_2(%arg0: i32) -> (i32, i32) {
    %c0_i32 = arith.constant 0 : i32
    %c0_i32_0 = arith.constant 0 : i32
    %c0_i32_1 = arith.constant 0 : i32
    return %c0_i32, %c0_i32_0 : i32, i32
  }
  func.func @transform_3(%arg0: i32) -> (i32, i32) {
    %c0_i32 = arith.constant 0 : i32
    %c0_i32_0 = arith.constant 0 : i32
    %c0_i32_1 = arith.constant 0 : i32
    return %c0_i32, %c0_i32_0 : i32, i32
  }
  func.func @transform_4(%arg0: i32) -> (i32, i32) {
    %c0_i32 = arith.constant 0 : i32
    %c0_i32_0 = arith.constant 0 : i32
    %c0_i32_1 = arith.constant 0 : i32
    return %c0_i32, %c0_i32_0 : i32, i32
  }
  func.func @transform_5(%arg0: i32) -> (i32, i32) {
    %c0_i32 = arith.constant 0 : i32
    %c0_i32_0 = arith.constant 0 : i32
    %c0_i32_1 = arith.constant 0 : i32
    return %c0_i32, %c0_i32_0 : i32, i32
  }
  func.func @transform_6(%arg0: i32) -> (i32, i32) {
    %c0_i32 = arith.constant 0 : i32
    %c0_i32_0 = arith.constant 0 : i32
    %c0_i32_1 = arith.constant 0 : i32
    return %c0_i32, %c0_i32_0 : i32, i32
  }
  func.func @transform_7(%arg0: i32) -> (i32, i32) {
    %c0_i32 = arith.constant 0 : i32
    %c0_i32_0 = arith.constant 0 : i32
    %c0_i32_1 = arith.constant 0 : i32
    return %c0_i32, %c0_i32_0 : i32, i32
  }
  func.func @transform_8(%arg0: i32) -> (i32, i32) {
    %c0_i32 = arith.constant 0 : i32
    %c0_i32_0 = arith.constant 0 : i32
    %c0_i32_1 = arith.constant 0 : i32
    return %c0_i32, %c0_i32_0 : i32, i32
  }
  func.func @transform_9(%arg0: i32) -> (i32, i32) {
    %c0_i32 = arith.constant 0 : i32
    %c0_i32_0 = arith.constant 0 : i32
    return %arg0, %c0_i32 : i32, i32
  }
}

</mosaic_0001>

<bundles_post_ra>
// kernel: tpu_custom_call.1
= control target key start
LH: loop header
LB: loop body
LE: loop exit
PB: predicated region body
PF: predicated region fallthrough
CT: control target
= control target key end

     0   :  { %14 = vsyncpa [#allocation3], 0  ;;  %s935_s0 = inlined_call_operand.hbm [shape: f32[16,32], index: 0, kind: input, shape index: {}]   ;;  %s936_s1 = inlined_call_operand.hbm [shape: bf16[32,128], index: 1, kind: input, shape index: {}]   ;;  %s937_s2 = inlined_call_operand.vmem [shape: f32[1,128], index: 2, kind: input, shape index: {}]   ;;  %s938_s3 = inlined_call_operand.vmem [shape: bf16[128,128], index: 3, kind: input, shape index: {}]   ;;  %s939_s4 = inlined_call_operand.vmem [shape: f32[1,128], index: 4, kind: input, shape index: {}]   ;;  %s940_s5 = inlined_call_operand.hbm [shape: bf16[128,128], index: 5, kind: input, shape index: {}]   ;;  %s941_s6 = inlined_call_operand.vmem [shape: f32[1,128], index: 6, kind: input, shape index: {}]   ;;  %s942_s7 = inlined_call_operand.vmem [shape: bf16[128,16], index: 7, kind: input, shape index: {}]   ;;  %s943_s8 = inlined_call_operand.vmem [shape: f32[1,16], index: 8, kind: input, shape index: {}]   ;;  %s944_s9 = inlined_call_operand.hbm [shape: f32[16,16], index: 9, kind: output, shape index: {}]  }
   0x1   :  { %15 = vsyncpa [#allocation6], 0 }
   0x2   :  { %16 = vsyncpa [#allocation4], 0  ;;  %s763_s30 = smov [#allocation5]  }
   0x3   :  { %s34_s10 = sshll.u32 %s763_s30, 4  ;;  %s35_s10 = int_to_ptr.vmem [resolvable:$true] %s34_s10 }
   0x4   :  { %s685_s11 = scalar_lea.vmem %s35_s10, 256  ;;  %p690_p1 = scmp.lt.s32.totalorder %s35_s10, %s35_s10 }
   0x5   :  { %p686_p0 = scmp.ne.s32.totalorder %s35_s10, %s685_s11  ;;  %p691_p2 = scmp.lt.s32.totalorder %s685_s11, %s685_s11 }
   0x7   :  { %p692_p3 = por %p691_p2, %p690_p1 }
   0x9   :  { %p693_p4 = pnand %p692_p3, %p686_p0 }
   0xb   :  { %696 = shalt.err (!%p693_p4)
}
   0xc   :  { %s764_s12 = smov 64   ;;  %s765_s13 = smov 4  }
   0xd   :  { %40 = dma.hbm_to_vmem [thread:$0]  %s936_s1, 256, %s35_s10, [#allocation6], %s764_s12, %s764_s12, %s765_s13  }
   0xe   :  { %s766_s16 = smov [#allocation2]  }
   0xf   :  { %s22_s17 = sshll.u32 %s766_s16, 4  ;;  %s23_s17 = int_to_ptr.vmem [resolvable:$true] %s22_s17 }
  0x10   :  { %s705_s18 = scalar_lea.vmem %s23_s17, 256  ;;  %p710_p6 = scmp.lt.s32.totalorder %s23_s17, %s23_s17 }
  0x11   :  { %p706_p5 = scmp.ne.s32.totalorder %s23_s17, %s705_s18  ;;  %p711_p7 = scmp.lt.s32.totalorder %s705_s18, %s705_s18 }
  0x13   :  { %p712_p8 = por %p711_p7, %p710_p6 }
  0x15   :  { %p713_p9 = pnand %p712_p8, %p706_p5 }
  0x17   :  { %716 = shalt.err (!%p713_p9)
}
  0x18   :  { %s767_s19 = smov 128   ;;  %s768_s20 = smov 8  }
  0x19   :  { %28 = dma.hbm_to_vmem [thread:$0]  %s935_s0, 256, %s23_s17, [#allocation3], %s767_s19, %s767_s19, %s768_s20  }
  0x1a   :  { %s769_s1 = smov [#allocation7]  }
  0x1b   :  { %s52_s23 = sshll.u32 %s769_s1, 4  ;;  %s53_s23 = int_to_ptr.vmem [resolvable:$true] %s52_s23 }
  0x1c   :  { %s725_s24 = scalar_lea.vmem %s53_s23, 1024  ;;  %p730_p11 = scmp.lt.s32.totalorder %s53_s23, %s53_s23 }
  0x1d   :  { %p726_p10 = scmp.ne.s32.totalorder %s53_s23, %s725_s24  ;;  %p731_p12 = scmp.lt.s32.totalorder %s725_s24, %s725_s24 }
  0x1f   :  { %p732_p13 = por %p731_p12, %p730_p11 }
  0x21   :  { %p733_p0 = pnand %p732_p13, %p726_p10 }
  0x23   :  { %736 = shalt.err (!%p733_p0)
}
  0x24   :  { %58 = dma.hbm_to_vmem [thread:$0]  %s940_s5, 1024, %s53_s23, [#allocation6], %s764_s12, %s764_s12, %s765_s13  }
  0x25   :  { %757 = dma.done.wait [#allocation3], 256  }
  0x26   :  { %758 = vsyncadd [#allocation3], 4294967040 }
  0x27   :  { %759 = dma.done.wait [#allocation6], 1280  }
  0x28   :  { %760 = vsyncadd [#allocation6], 4294966016  ;;  %v770_v0 = vmov 0.0   ;;  %vm771_vm0 = vmmov 0   ;;  %v651_v1 = vld [vmem:[#allocation5 + $0x8] sm:$0xff]   ;;  %v652_v2 = vld [vmem:[#allocation5] sm:$0xff]  }
  0x29   :  { %573 = vmatprep.subr.bf16.mxu0 %v770_v0  ;;  %577 = vmatprep.mubr.msk.bf16.mxu0 %vm771_vm0, %v770_v0  ;;  %v75_v3 = vld [vmem:[#allocation2] sm:$0xff]  ;;  %v76_v4 = vld [vmem:[#allocation2 + $0x8] sm:$0xff]  ;;  %v653_v5 = vld [vmem:[%s938_s3 + $0x38] sm:$0xff]   ;;  %vm101_vm1 = vcmask 261120   ;;  %vm491_vm2 = vcmask 130048  }
  0x2a   :  { %581 = vmatprep.subr.bf16.mxu1 %v770_v0  ;;  %597 = vmatprep.mubr.msk.bf16.mxu1 %vm771_vm0, %v770_v0  ;;  %v77_v6 = vpack.c.bf16 %v76_v4, %v75_v3  ;;  %v654_v7 = vld [vmem:[%s938_s3 + $0x30] sm:$0xff]   ;;  %v655_v8 = vld [vmem:[%s938_s3 + $0x28] sm:$0xff]   ;;  %v656_v9 = vld [vmem:[%s938_s3 + $0x20] sm:$0xff]  }
  0x2b   :  { %574 = vmatpush3.bf16.msra.mxu0 %v651_v1  ;;  %582 = vmatpush3.bf16.msra.mxu1 %v653_v5  ;;  %v657_v10 = vld [vmem:[%s938_s3 + $0x18] sm:$0xff]   ;;  %v658_v11 = vld [vmem:[%s938_s3 + $0x10] sm:$0xff]   ;;  %v659_v12 = vld [vmem:[%s938_s3 + $0x8] sm:$0xff]  }
  0x2c   :  { %575 = vmatprep.subr.bf16.mxu0 %v770_v0  ;;  %583 = vmatprep.subr.bf16.mxu1 %v770_v0  ;;  %v660_v13 = vld [vmem:[%s938_s3] sm:$0xff]   ;;  %v661_v14 = vld [vmem:[#allocation7 + $0x38] sm:$0xff]   ;;  %v662_v15 = vld [vmem:[#allocation7 + $0x30] sm:$0xff]  }
  0x2d   :  { %v663_v16 = vld [vmem:[#allocation7 + $0x28] sm:$0xff]   ;;  %v664_v17 = vld [vmem:[#allocation7 + $0x20] sm:$0xff]   ;;  %v665_v18 = vld [vmem:[#allocation7 + $0x18] sm:$0xff]  }
  0x2e   :  { %v512_v19 = vld [vmem:[%s937_s2] ss:$0 sm:$0xff]  ;;  %v666_v29 = vld [vmem:[#allocation7 + $0x10] sm:$0xff]   ;;  %v667_v30 = vld [vmem:[#allocation7 + $0x8] sm:$0xff]  }
  0x2f   :  { %576 = vmatpush3.bf16.msra.mxu0 %v652_v2  ;;  %584 = vmatpush3.bf16.msra.mxu1 %v654_v7  ;;  %v668_v31 = vld [vmem:[#allocation7] sm:$0xff]   ;;  %v669_v32 = vld [vmem:[%s942_s7 + $0x38] sm:$0xff]   ;;  %v670_v33 = vld [vmem:[%s942_s7 + $0x30] sm:$0xff]  }
  0x30   :  { %601 = vmatprep.subr.bf16.mxu0 %v770_v0  ;;  %585 = vmatprep.subr.bf16.mxu1 %v770_v0  ;;  %v671_v34 = vld [vmem:[%s942_s7 + $0x28] sm:$0xff]   ;;  %v672_v35 = vld [vmem:[%s942_s7 + $0x20] sm:$0xff]   ;;  %v673_v36 = vld [vmem:[%s942_s7 + $0x18] sm:$0xff]  }
  0x31   :  { %v516_v37 = vld [vmem:[%s939_s4] ss:$0 sm:$0xff]  ;;  %v674_v47 = vld [vmem:[%s942_s7 + $0x10] sm:$0xff]   ;;  %v675_v48 = vld [vmem:[%s942_s7 + $0x8] sm:$0xff]  }
  0x32   :  { %578 = vmatmul.mubr.msk.bf16.vlgmr.msra.gmra.mxu0 %vm101_vm1, %v77_v6  ;;  %v676_v49 = vld [vmem:[%s942_s7] sm:$0xff]   ;;  %s772_s7 = smov [#allocation8]  }
  0x33   :  { %617 = vmatprep.mubr.msk.bf16.mxu0 %vm771_vm0, %v770_v0  ;;  %586 = vmatpush3.bf16.msra.mxu1 %v655_v8  ;;  %v525_v50 = vld [vmem:[%s941_s6] ss:$0 sm:$0xff]  ;;  %s499_s6 = sshll.u32 %s772_s7, 4  ;;  %s500_s6 = int_to_ptr.vmem [resolvable:$true] %s499_s6 }
  0x34   :  { %587 = vmatprep.subr.bf16.mxu1 %v770_v0  ;;  %602 = vmatpush3.bf16.msra.mxu0 %v661_v14  ;;  %v534_v60 = vld [vmem:[%s943_s8] ss:$0 sm:$0xff]  ;;  %s737_s21 = scalar_lea.vmem %s500_s6, 256  ;;  %p742_p2 = scmp.lt.s32.totalorder %s500_s6, %s500_s6 }
  0x35   :  { %603 = vmatprep.subr.bf16.mxu0 %v770_v0  ;;  %p738_p1 = scmp.ne.s32.totalorder %s500_s6, %s737_s21  ;;  %p743_p3 = scmp.lt.s32.totalorder %s737_s21, %s737_s21 }
  0x37   :  { %588 = vmatpush3.bf16.msra.mxu1 %v656_v9  ;;  %p744_p4 = por %p743_p3, %p742_p2 }
  0x38   :  { %589 = vmatprep.subr.bf16.mxu1 %v770_v0  ;;  %604 = vmatpush3.bf16.msra.mxu0 %v662_v15 }
  0x39   :  { %605 = vmatprep.subr.bf16.mxu0 %v770_v0  ;;  %p745_p5 = pnand %p744_p4, %p738_p1 }
  0x3b   :  { %590 = vmatpush3.bf16.msra.mxu1 %v657_v10 }
  0x3c   :  { %591 = vmatprep.subr.bf16.mxu1 %v770_v0  ;;  %606 = vmatpush3.bf16.msra.mxu0 %v663_v16 }
  0x3d   :  { %607 = vmatprep.subr.bf16.mxu0 %v770_v0 }
  0x3f   :  { %592 = vmatpush3.bf16.msra.mxu1 %v658_v11 }
  0x40   :  { %593 = vmatprep.subr.bf16.mxu1 %v770_v0  ;;  %608 = vmatpush3.bf16.msra.mxu0 %v664_v17 }
  0x41   :  { %609 = vmatprep.subr.bf16.mxu0 %v770_v0 }
  0x43   :  { %594 = vmatpush3.bf16.msra.mxu1 %v659_v12 }
  0x44   :  { %595 = vmatprep.subr.bf16.mxu1 %v770_v0  ;;  %610 = vmatpush3.bf16.msra.mxu0 %v665_v18 }
  0x45   :  { %611 = vmatprep.subr.bf16.mxu0 %v770_v0 }
  0x47   :  { %596 = vmatpush3.bf16.msra.mxu1 %v660_v13 }
  0x48   :  { %621 = vmatprep.subr.bf16.mxu1 %v770_v0  ;;  %612 = vmatpush3.bf16.msra.mxu0 %v666_v29 }
  0x49   :  { %613 = vmatprep.subr.bf16.mxu0 %v770_v0 }
  0x4c   :  { %614 = vmatpush3.bf16.msra.mxu0 %v667_v30 }
  0x4d   :  { %615 = vmatprep.subr.bf16.mxu0 %v770_v0 }
  0x50   :  { %616 = vmatpush3.bf16.msra.mxu0 %v668_v31 }
  0xf2   :  { %v139_v20 = vpop.f32.mrf.mxu0 }
  0xf3   :  { %v140_v22 = vadd.f32 %v512_v19, %v139_v20 }
  0xf4   :  { %v579_v21 = vpop.f32.mrf.mxu0 }
  0xf5   :  { %v146_v26 = vmax.f32 %v140_v22, 0.0 }
  0xf6   :  { %v142_v23 = vpop.f32.mrf.mxu0 }
  0xf7   :  { %v143_v24 = vadd.f32 %v512_v19, %v142_v23 }
  0xf8   :  { %v580_v25 = vpop.f32.mrf.mxu0 }
  0xf9   :  { %v147_v27 = vmax.f32 %v143_v24, 0.0 }
  0xfb   :  { %v148_v28 = vpack.c.bf16 %v147_v27, %v146_v26 }
  0xfd   :  { %598 = vmatmul.mubr.bf16.vlgmr.msra.gmra.mxu1 %v148_v28 }
  0xfe   :  { %637 = vmatprep.mubr.msk.bf16.mxu1 %vm771_vm0, %v770_v0  ;;  %622 = vmatpush3.bf16.msra.mxu1 %v669_v32 }
  0xff   :  { %623 = vmatprep.subr.bf16.mxu1 %v770_v0 }
 0x102   :  { %624 = vmatpush3.bf16.msra.mxu1 %v670_v33 }
 0x103   :  { %625 = vmatprep.subr.bf16.mxu1 %v770_v0 }
 0x106   :  { %626 = vmatpush3.bf16.msra.mxu1 %v671_v34 }
 0x107   :  { %627 = vmatprep.subr.bf16.mxu1 %v770_v0 }
 0x10a   :  { %628 = vmatpush3.bf16.msra.mxu1 %v672_v35 }
 0x10b   :  { %629 = vmatprep.subr.bf16.mxu1 %v770_v0 }
 0x10e   :  { %630 = vmatpush3.bf16.msra.mxu1 %v673_v36 }
 0x10f   :  { %631 = vmatprep.subr.bf16.mxu1 %v770_v0 }
 0x112   :  { %632 = vmatpush3.bf16.msra.mxu1 %v674_v47 }
 0x113   :  { %633 = vmatprep.subr.bf16.mxu1 %v770_v0 }
 0x116   :  { %634 = vmatpush3.bf16.msra.mxu1 %v675_v48 }
 0x117   :  { %635 = vmatprep.subr.bf16.mxu1 %v770_v0 }
 0x11a   :  { %636 = vmatpush3.bf16.msra.mxu1 %v676_v49 }
 0x1bd   :  { %v254_v38 = vpop.f32.mrf.mxu1 }
 0x1be   :  { %v255_v40 = vadd.f32 %v516_v37, %v254_v38 }
 0x1bf   :  { %v599_v39 = vpop.f32.mrf.mxu1 }
 0x1c0   :  { %v261_v44 = vmax.f32 %v255_v40, 0.0 }
 0x1c1   :  { %v257_v41 = vpop.f32.mrf.mxu1 }
 0x1c2   :  { %v258_v42 = vadd.f32 %v516_v37, %v257_v41 }
 0x1c3   :  { %v600_v43 = vpop.f32.mrf.mxu1 }
 0x1c4   :  { %v262_v45 = vmax.f32 %v258_v42, 0.0 }
 0x1c6   :  { %v263_v46 = vpack.c.bf16 %v262_v45, %v261_v44 }
 0x1c8   :  { %618 = vmatmul.mubr.bf16.vlgmr.msra.gmra.mxu0 %v263_v46 }
 0x288   :  { %v369_v51 = vpop.f32.mrf.mxu0 }
 0x289   :  { %v370_v53 = vadd.f32 %v525_v50, %v369_v51 }
 0x28a   :  { %v619_v52 = vpop.f32.mrf.mxu0 }
 0x28b   :  { %v376_v57 = vmax.f32 %v370_v53, 0.0 }
 0x28c   :  { %v372_v54 = vpop.f32.mrf.mxu0 }
 0x28d   :  { %v373_v55 = vadd.f32 %v525_v50, %v372_v54 }
 0x28e   :  { %v620_v56 = vpop.f32.mrf.mxu0 }
 0x28f   :  { %v377_v58 = vmax.f32 %v373_v55, 0.0 }
 0x291   :  { %v378_v59 = vpack.c.bf16 %v377_v58, %v376_v57 }
 0x293   :  { %638 = vmatmul.mubr.bf16.vlgmr.msra.gmra.mxu1 %v378_v59 }
 0x353   :  { %v484_v61 = vpop.f32.mrf.mxu1 }
 0x354   :  { %v485_v62 = vadd.f32 %v534_v60, %v484_v61 }
 0x355   :  { %v639_v63 = vpop.f32.mrf.mxu1 }
 0x356   :  { %492 = vst.msk [vmem:[#allocation8] sm:$0xff] %vm491_vm2, %v485_v62 }
 0x357   :  { %v487_v0 = vpop.f32.mrf.mxu1 }
 0x358   :  { %v488_v1 = vadd.f32 %v534_v60, %v487_v0 }
 0x359   :  { %v640_v2 = vpop.f32.mrf.mxu1 }
 0x35a   :  { %493 = vst.msk [vmem:[#allocation8 + $0x8] sm:$0xff] %vm491_vm2, %v488_v1 }
 0x35b   :  { %748 = shalt.err (!%p745_p5)
}
 0x35c   :  { %505 = dma.vmem_to_hbm [thread:$0]  %s500_s6, 256, %s944_s9, [#allocation4], %s767_s19, %s767_s19, %s768_s20  }
 0x35d   :  { %761 = dma.done.wait [#allocation4], 256  }
 0x35e   :  { %762 = vsyncadd [#allocation4], 4294967040 }
 0x35f   :  { %509 = vsyncpa [#allocation3], 1 }
 0x360   :  { %510 = vsyncpa [#allocation6], 1 }
 0x361   :  { %511 = vsyncpa [#allocation4], 1 }

</bundles_post_ra>
